<compile_context>
chip_gen: v7x
topology: tpu7x:2x2x1
jax: 0.10.0
libtpu: 0.0.40
codegen_flags: <defaults>
</compile_context>

<pallas_src>
import jax
import jax.numpy as jnp
import numpy as np
from jax.experimental import pallas as pl
from jax.experimental.pallas import tpu as pltpu

H = 0.5
EPS = 1e-8


def _round_up(a, m):
    return (a + m - 1) // m * m


def htsk_kernel(x_ref, ab_ref, c0_ref, wp_ref, e_ref, s_ref, w2_ref, out_ref):
    x = x_ref[...]                                                     # [TB, D] f32

    # --- fused firing-level logits on the MXU: [x*x | x] @ [A ; Bm] + const ---
    xa = jnp.concatenate([x * x, x], axis=-1)                          # [TB, 2D]
    logits = jnp.dot(xa, ab_ref[...], preferred_element_type=jnp.float32) + c0_ref[...]

    # --- softmax over rules (exp + reciprocal on the EUP slot) ---
    logits = logits - jnp.max(logits, axis=1, keepdims=True)
    e = jnp.exp(logits)
    frs = e * pl.reciprocal(jnp.sum(e, axis=1, keepdims=True), approx=True)   # [TB, R]

    # --- order-1 consequent via selector matmuls (reduction over rules on the MXU) ---
    t = jnp.dot(x, wp_ref[...], preferred_element_type=jnp.float32)           # [TB, R*O]
    fr_exp = jnp.dot(frs, e_ref[...], preferred_element_type=jnp.float32)     # [TB, R*O]
    out1 = jnp.dot(fr_exp * t, s_ref[...], preferred_element_type=jnp.float32)  # [TB, O]

    # --- order-0 block (the appended frs features); linear bias folded into W2 ---
    out_ref[...] = out1 + jnp.dot(frs, w2_ref[...], preferred_element_type=jnp.float32)


def htsk_forward(x, centers, sigmas, w, b, *, block_b=None):
    """x: [B, in_dim]; centers/sigmas: [in_dim, n_rules];
    w: [out_dim, (in_dim+1)*n_rules] (torch nn.Linear weight); b: [out_dim]."""
    B, D = x.shape
    R = centers.shape[1]
    O = w.shape[0]

    # ---- parameter-only preprocessing, hoisted out of the kernel ----
    scale = H / (sigmas * sigmas) + EPS                                  # [D, R] (torch precedence)
    ab = jnp.concatenate([-scale / D, 2.0 * centers * scale / D], axis=0
                         ).astype(jnp.float32)                           # [2D, R]
    c0 = (-(jnp.sum(centers * centers * scale, axis=0, keepdims=True) / D)
          ).astype(jnp.float32)                                          # [1, R]

    w1 = w[:, : R * D].reshape(O, R, D)                                  # W1[o, r, d]
    wp = jnp.transpose(w1, (2, 1, 0)).reshape(D, R * O).astype(jnp.float32)   # [D, R*O]
    w2b = (jnp.transpose(w[:, R * D:]) + b[None, :]).astype(jnp.float32)      # [R, O], bias folded

    # selector matrices for the rule-reduction matmul
    e_mat = jnp.asarray(np.kron(np.eye(R, dtype=np.float32),
                                np.ones((1, O), np.float32)))            # [R, R*O]
    s_mat = jnp.asarray(np.kron(np.ones((R, 1), np.float32),
                                np.eye(O, dtype=np.float32)))            # [R*O, O]

    # ---- batch tiling: ~1 MiB x tile per step (1024..4096 rows), no wrapper pad ----
    if block_b is None:
        block_b = int(min(max(_round_up((1 << 20) // max(4 * D, 1), 8), 1024), 4096))
    tb = max(8, min(_round_up(block_b, 8), _round_up(B, 8)))
    # Prefer >= 2 grid steps so the "parallel" batch axis can shard across v7x's two TCs.
    if B >= 16 and pl.cdiv(B, tb) < 2:
        tb = max(8, _round_up(pl.cdiv(B, 2), 8))
    grid = (pl.cdiv(B, tb),)

    # ---- explicit VMEM budget: resident params + double-buffered tiles + intermediates ----
    param_bytes = 4 * int(ab.size + c0.size + wp.size + e_mat.size + s_mat.size + w2b.size)
    stream_bytes = 4 * tb * (D + O)                                      # x tile + out tile
    inter_bytes = 4 * tb * (2 * D + 2 * (R * O) + 3 * R + 2 * O)          # xa, t, fr_exp, logits...
    vmem_limit = int(min(2 * param_bytes + 2 * stream_bytes + 2 * inter_bytes + (4 << 20),
                         64 << 20))

    out = pl.pallas_call(
        htsk_kernel,
        out_shape=jax.ShapeDtypeStruct((B, O), jnp.float32),
        grid=grid,
        in_specs=[
            pl.BlockSpec((tb, D), lambda i: (i, 0)),          # x tile (pipelined)
            pl.BlockSpec((2 * D, R), lambda i: (0, 0)),       # [A ; Bm]   (VMEM-resident)
            pl.BlockSpec((1, R), lambda i: (0, 0)),           # const
            pl.BlockSpec((D, R * O), lambda i: (0, 0)),       # Wp
            pl.BlockSpec((R, R * O), lambda i: (0, 0)),       # E (rule expansion)
            pl.BlockSpec((R * O, O), lambda i: (0, 0)),       # S (group-sum selector)
            pl.BlockSpec((R, O), lambda i: (0, 0)),           # W2 + bias
        ],
        out_specs=pl.BlockSpec((tb, O), lambda i: (i, 0)),
        compiler_params=pltpu.CompilerParams(
            dimension_semantics=("parallel",),
            vmem_limit_bytes=vmem_limit,
        ),
    )(x.astype(jnp.float32), ab, c0, wp, e_mat, s_mat, w2b)
    return out


def ref_forward(x, centers, sigmas, w, b):
    # Original (torch-equivalent) formulation, used as the correctness oracle.
    z = -((x[:, :, None] - centers[None, :, :]) ** 2) * (H / sigmas**2 + EPS)
    frs = jax.nn.softmax(jnp.mean(z, axis=1), axis=1)
    xp = (x[:, None, :] * frs[:, :, None]).reshape(x.shape[0], -1)
    feat = jnp.concatenate([xp, frs], axis=1)
    return feat @ w.T + b


def _run_case(key, B, in_dim, n_rules, out_dim):
    feat_dim = (in_dim + 1) * n_rules
    kx, kc, kw, kb = jax.random.split(key, 4)
    x = jax.random.normal(kx, (B, in_dim), dtype=jnp.float32)
    centers = jax.random.normal(kc, (in_dim, n_rules), dtype=jnp.float32)   # N(0,1)
    sigmas = jnp.ones((in_dim, n_rules), dtype=jnp.float32)                 # sigma_scale = 1
    bound = 1.0 / np.sqrt(feat_dim)
    w = jax.random.uniform(kw, (out_dim, feat_dim), minval=-bound, maxval=bound,
                           dtype=jnp.float32)                               # nn.Linear weight
    b = jax.random.uniform(kb, (out_dim,), minval=-bound, maxval=bound,
                           dtype=jnp.float32)                               # nn.Linear bias

    out = jax.block_until_ready(htsk_forward(x, centers, sigmas, w, b))
    ref = ref_forward(x, centers, sigmas, w, b)
    assert out.shape == (B, out_dim)
    # Tolerance covers the expanded-square logits + EUP approximate reciprocal;
    # structural errors would be orders of magnitude larger.
    err = float(np.max(np.abs(np.asarray(out) - np.asarray(ref))))
    assert np.allclose(np.asarray(out), np.asarray(ref), atol=5e-4, rtol=5e-4), err


if __name__ == "__main__":
    key = jax.random.PRNGKey(0)
    k1, k2 = jax.random.split(key)
    # Small shapes consistent with the module: X is [batch, in_dim].
    _run_case(k1, B=8, in_dim=8, n_rules=16, out_dim=4)
    # Larger batch: exercises multi-step grid + ragged (masked) last tile.
    _run_case(k2, B=200, in_dim=16, n_rules=32, out_dim=8)
    print("KERNEL_OK")
</pallas_src>

<mosaic_0001>
module attributes {stable_mosaic.version = 11 : i64} {
  func.func @htsk_kernel(%arg0: i32, %arg1: memref<8x8xf32, #tpu.memory_space<vmem>>, %arg2: memref<16x16xf32, #tpu.memory_space<vmem>>, %arg3: memref<1x16xf32, #tpu.memory_space<vmem>>, %arg4: memref<8x64xf32, #tpu.memory_space<vmem>>, %arg5: memref<16x64xf32, #tpu.memory_space<vmem>>, %arg6: memref<64x4xf32, #tpu.memory_space<vmem>>, %arg7: memref<16x4xf32, #tpu.memory_space<vmem>>, %arg8: memref<8x4xf32, #tpu.memory_space<vmem>>) attributes {dimension_semantics = [#tpu.dimension_semantics<parallel>], iteration_bounds = array<i64: 1>, scalar_prefetch = 0 : i64, scratch_operands = 0 : i64, tpu.core_type = #tpu.core_type<tc>, window_params = [{transform_indices = @transform_0, window_bounds = array<i64: 8, 8>}, {pipeline_mode = #tpu.pipeline_mode<synchronous>, transform_indices = @transform_1, window_bounds = array<i64: 16, 16>}, {pipeline_mode = #tpu.pipeline_mode<synchronous>, transform_indices = @transform_2, window_bounds = array<i64: 1, 16>}, {pipeline_mode = #tpu.pipeline_mode<synchronous>, transform_indices = @transform_3, window_bounds = array<i64: 8, 64>}, {pipeline_mode = #tpu.pipeline_mode<synchronous>, transform_indices = @transform_4, window_bounds = array<i64: 16, 64>}, {pipeline_mode = #tpu.pipeline_mode<synchronous>, transform_indices = @transform_5, window_bounds = array<i64: 64, 4>}, {pipeline_mode = #tpu.pipeline_mode<synchronous>, transform_indices = @transform_6, window_bounds = array<i64: 16, 4>}, {transform_indices = @transform_7, window_bounds = array<i64: 8, 4>}]} {
    %c0 = arith.constant 0 : index
    %c0_0 = arith.constant 0 : index
    %0 = vector.load %arg1[%c0, %c0_0] : memref<8x8xf32, #tpu.memory_space<vmem>>, vector<8x8xf32>
    %1 = arith.mulf %0, %0 : vector<8x8xf32>
    %2 = tpu.concatenate %1, %0 in 1 : vector<8x8xf32>, vector<8x8xf32> -> vector<8x16xf32>
    %c0_1 = arith.constant 0 : index
    %c0_2 = arith.constant 0 : index
    %3 = vector.load %arg2[%c0_1, %c0_2] : memref<16x16xf32, #tpu.memory_space<vmem>>, vector<16x16xf32>
    %cst = arith.constant dense<0.000000e+00> : vector<8x16xf32>
    %4 = tpu.matmul %2, %3, %cst {dimension_numbers = #tpu.dot_dimension_numbers<[1], [0], [0], [1], [0, 0, 1, 1], [], []>} : vector<8x16xf32>, vector<16x16xf32>, vector<8x16xf32> -> vector<8x16xf32>
    %c0_3 = arith.constant 0 : index
    %c0_4 = arith.constant 0 : index
    %5 = vector.load %arg3[%c0_3, %c0_4] : memref<1x16xf32, #tpu.memory_space<vmem>>, vector<1x16xf32>
    %6 = vector.broadcast %5 : vector<1x16xf32> to vector<8x16xf32>
    %7 = arith.addf %4, %6 : vector<8x16xf32>
    %cst_5 = arith.constant dense<0xFF800000> : vector<8xf32>
    %8 = vector.multi_reduction <maximumf>, %7, %cst_5 [1] : vector<8x16xf32> to vector<8xf32>
    %9 = vector.shape_cast %8 : vector<8xf32> to vector<8x1xf32>
    %10 = vector.broadcast %9 : vector<8x1xf32> to vector<8x16xf32>
    %11 = arith.subf %7, %10 : vector<8x16xf32>
    %12 = math.exp %11 : vector<8x16xf32>
    %cst_6 = arith.constant dense<0.000000e+00> : vector<8xf32>
    %13 = vector.multi_reduction <add>, %12, %cst_6 [1] : vector<8x16xf32> to vector<8xf32>
    %14 = vector.shape_cast %13 : vector<8xf32> to vector<8x1xf32>
    %15 = tpu.reciprocal %14 {approx = true} : vector<8x1xf32> -> vector<8x1xf32>
    %16 = vector.broadcast %15 : vector<8x1xf32> to vector<8x16xf32>
    %17 = arith.mulf %12, %16 : vector<8x16xf32>
    %c0_7 = arith.constant 0 : index
    %c0_8 = arith.constant 0 : index
    %18 = vector.load %arg4[%c0_7, %c0_8] : memref<8x64xf32, #tpu.memory_space<vmem>>, vector<8x64xf32>
    %cst_9 = arith.constant dense<0.000000e+00> : vector<8x64xf32>
    %19 = tpu.matmul %0, %18, %cst_9 {dimension_numbers = #tpu.dot_dimension_numbers<[1], [0], [0], [1], [0, 0, 1, 1], [], []>} : vector<8x8xf32>, vector<8x64xf32>, vector<8x64xf32> -> vector<8x64xf32>
    %c0_10 = arith.constant 0 : index
    %c0_11 = arith.constant 0 : index
    %20 = vector.load %arg5[%c0_10, %c0_11] : memref<16x64xf32, #tpu.memory_space<vmem>>, vector<16x64xf32>
    %cst_12 = arith.constant dense<0.000000e+00> : vector<8x64xf32>
    %21 = tpu.matmul %17, %20, %cst_12 {dimension_numbers = #tpu.dot_dimension_numbers<[1], [0], [0], [1], [0, 0, 1, 1], [], []>} : vector<8x16xf32>, vector<16x64xf32>, vector<8x64xf32> -> vector<8x64xf32>
    %22 = arith.mulf %21, %19 : vector<8x64xf32>
    %c0_13 = arith.constant 0 : index
    %c0_14 = arith.constant 0 : index
    %23 = vector.load %arg6[%c0_13, %c0_14] : memref<64x4xf32, #tpu.memory_space<vmem>>, vector<64x4xf32>
    %cst_15 = arith.constant dense<0.000000e+00> : vector<8x4xf32>
    %24 = tpu.matmul %22, %23, %cst_15 {dimension_numbers = #tpu.dot_dimension_numbers<[1], [0], [0], [1], [0, 0, 1, 1], [], []>} : vector<8x64xf32>, vector<64x4xf32>, vector<8x4xf32> -> vector<8x4xf32>
    %c0_16 = arith.constant 0 : index
    %c0_17 = arith.constant 0 : index
    %25 = vector.load %arg7[%c0_16, %c0_17] : memref<16x4xf32, #tpu.memory_space<vmem>>, vector<16x4xf32>
    %cst_18 = arith.constant dense<0.000000e+00> : vector<8x4xf32>
    %26 = tpu.matmul %17, %25, %cst_18 {dimension_numbers = #tpu.dot_dimension_numbers<[1], [0], [0], [1], [0, 0, 1, 1], [], []>} : vector<8x16xf32>, vector<16x4xf32>, vector<8x4xf32> -> vector<8x4xf32>
    %27 = arith.addf %24, %26 : vector<8x4xf32>
    %c0_19 = arith.constant 0 : index
    %c0_20 = arith.constant 0 : index
    %28 = vector.load %arg8[%c0_19, %c0_20] : memref<8x4xf32, #tpu.memory_space<vmem>>, vector<8x4xf32>
    tpu.vector_store %arg8[%c0_19, %c0_20], %27 {strides = array<i32>} : memref<8x4xf32, #tpu.memory_space<vmem>>, vector<8x4xf32>,
    return
  }
  func.func @transform_0(%arg0: i32) -> (i32, i32) {
    %c0_i32 = arith.constant 0 : i32
    %c0_i32_0 = arith.constant 0 : i32
    return %arg0, %c0_i32 : i32, i32
  }
  func.func @transform_1(%arg0: i32) -> (i32, i32) {
    %c0_i32 = arith.constant 0 : i32
    %c0_i32_0 = arith.constant 0 : i32
    %c0_i32_1 = arith.constant 0 : i32
    return %c0_i32, %c0_i32_0 : i32, i32
  }
  func.func @transform_2(%arg0: i32) -> (i32, i32) {
    %c0_i32 = arith.constant 0 : i32
    %c0_i32_0 = arith.constant 0 : i32
    %c0_i32_1 = arith.constant 0 : i32
    return %c0_i32, %c0_i32_0 : i32, i32
  }
  func.func @transform_3(%arg0: i32) -> (i32, i32) {
    %c0_i32 = arith.constant 0 : i32
    %c0_i32_0 = arith.constant 0 : i32
    %c0_i32_1 = arith.constant 0 : i32
    return %c0_i32, %c0_i32_0 : i32, i32
  }
  func.func @transform_4(%arg0: i32) -> (i32, i32) {
    %c0_i32 = arith.constant 0 : i32
    %c0_i32_0 = arith.constant 0 : i32
    %c0_i32_1 = arith.constant 0 : i32
    return %c0_i32, %c0_i32_0 : i32, i32
  }
  func.func @transform_5(%arg0: i32) -> (i32, i32) {
    %c0_i32 = arith.constant 0 : i32
    %c0_i32_0 = arith.constant 0 : i32
    %c0_i32_1 = arith.constant 0 : i32
    return %c0_i32, %c0_i32_0 : i32, i32
  }
  func.func @transform_6(%arg0: i32) -> (i32, i32) {
    %c0_i32 = arith.constant 0 : i32
    %c0_i32_0 = arith.constant 0 : i32
    %c0_i32_1 = arith.constant 0 : i32
    return %c0_i32, %c0_i32_0 : i32, i32
  }
  func.func @transform_7(%arg0: i32) -> (i32, i32) {
    %c0_i32 = arith.constant 0 : i32
    %c0_i32_0 = arith.constant 0 : i32
    return %arg0, %c0_i32 : i32, i32
  }
}

</mosaic_0001>

<bundles_post_ra>
// kernel: tpu_custom_call.1
= control target key start
LH: loop header
LB: loop body
LE: loop exit
PB: predicated region body
PF: predicated region fallthrough
CT: control target
= control target key end

     0   :  { %v538_v1 = vmov 0.0|0.0   ;;  %vm539_vm0 = vmmov 0   ;;  %v540_v4 = vmov 0.0   ;;  %s541_s30 = smov 8   ;;  %vm32_vm1 = vcmask 64512   ;;  %s654_s0 = inlined_call_operand.vmem [shape: f32[8,8], index: 0, kind: input, shape index: {}]   ;;  %s655_s1 = inlined_call_operand.vmem [shape: f32[16,16], index: 1, kind: input, shape index: {}]   ;;  %s656_s2 = inlined_call_operand.vmem [shape: f32[1,16], index: 2, kind: input, shape index: {}]   ;;  %s657_s3 = inlined_call_operand.vmem [shape: f32[8,64], index: 3, kind: input, shape index: {}]   ;;  %s658_s4 = inlined_call_operand.vmem [shape: f32[16,64], index: 4, kind: input, shape index: {}]   ;;  %s659_s5 = inlined_call_operand.vmem [shape: f32[64,4], index: 5, kind: input, shape index: {}]   ;;  %s660_s6 = inlined_call_operand.vmem [shape: f32[16,4], index: 6, kind: input, shape index: {}]   ;;  %s661_s7 = inlined_call_operand.vmem [shape: f32[8,4], index: 7, kind: output, shape index: {}]  }
   0x1   :  { %v26_v0 = vld [vmem:[%s654_s0] sm:$0xff]  ;;  %508 = vmatprep.subr.bf16.mxu1 %v538_v1  ;;  %v35_v3 = vld [vmem:[%s655_s1 + $0x8] sm:$0xff]  ;;  %467 = vmatprep.mubr.msk.f32.mxu1 %vm539_vm0, %v540_v4  ;;  %vm43_vm2 = vcmask 130048   ;;  %v279_v25 = vld [vmem:[%s659_s5 + $0x10] sm:$0xff]  ;;  %vm357_vm3 = vcmask 523264   ;;  %vm431_vm4 = vcmask 31744  }
   0x2   :  { %v34_v2 = vld [vmem:[%s655_s1] sm:$0xff]  ;;  %29 = vrot.lane.b32.xlu0 %v26_v0, %s541_s30  ;;  %517 = vmatprep.subr.bf16.mxu0 %v538_v1  ;;  %v27_v6 = vmul.f32 %v26_v0, %v26_v0  ;;  %v202_v21 = vld [vmem:[%s658_s4 + $0x8] sm:$0xff]  ;;  %v280_v27 = vld [vmem:[%s659_s5 + $0x18] sm:$0xff] }
   0x3   :  { %v509_v5 = vpack.c.bf16 %v35_v3, %v34_v2  ;;  %505 = vmatprep.mubr.msk.f32.mxu0 %vm539_vm0, %v540_v4  ;;  %v437_v9 = vld [vmem:[%s656_s2] ss:$0 sm:$0xff]  ;;  %v278_v24 = vld [vmem:[%s659_s5 + $0x8] sm:$0xff]  ;;  %v521_v28 = vpack.c.bf16 %v280_v27, %v279_v25  ;;  %v283_v40 = vld [vmem:[%s659_s5 + $0x30] sm:$0xff] }
   0x4   :  { %v128_v19 = vld [vmem:[%s657_s3] sm:$0xff]  ;;  %v282_v30 = vld [vmem:[%s659_s5 + $0x28] sm:$0xff]  ;;  %v284_v41 = vld [vmem:[%s659_s5 + $0x38] sm:$0xff] }
   0x5   :  { %510 = vmatpush3.bf16.msra.mxu1 %v509_v5  ;;  %v201_v20 = vld [vmem:[%s658_s4] sm:$0xff]  ;;  %v286_v34 = vld [vmem:[%s660_s6 + $0x8] sm:$0xff]  ;;  %v527_v42 = vpack.c.bf16 %v284_v41, %v283_v40 }
   0x6   :  { %470 = vmatprep.subr.mxu1 %v540_v4  ;;  %v512_v22 = vpack.c.bf16 %v202_v21, %v201_v20  ;;  %v277_v23 = vld [vmem:[%s659_s5] sm:$0xff] }
   0x7   :  { %v518_v26 = vpack.c.bf16 %v278_v24, %v277_v23  ;;  %v281_v29 = vld [vmem:[%s659_s5 + $0x20] sm:$0xff] }
   0x8   :  { %v524_v31 = vpack.c.bf16 %v282_v30, %v281_v29  ;;  %v285_v33 = vld [vmem:[%s660_s6] sm:$0xff] }
   0x9   :  { %519 = vmatpush3.bf16.msra.mxu0 %v518_v26  ;;  %v515_v36 = vpack.c.bf16 %v286_v34, %v285_v33 }
   0xa   :  { %520 = vmatprep.subr.bf16.mxu0 %v538_v1 }
   0xd   :  { %522 = vmatpush3.bf16.msra.mxu0 %v521_v28 }
   0xe   :  { %523 = vmatprep.subr.bf16.mxu0 %v538_v1 }
  0x11   :  { %525 = vmatpush3.bf16.msra.mxu0 %v524_v31 }
  0x12   :  { %526 = vmatprep.subr.bf16.mxu0 %v538_v1 }
  0x15   :  { %528 = vmatpush3.bf16.msra.mxu0 %v527_v42 }
  0x74   :  { %v30_v7 = vpop.permute.xlu0 %29 }
  0x75   :  { %v33_v8 = vsel %vm32_vm1, %v27_v6, %v30_v7 }
  0x76   :  { %468 = vmatmul.mubr.msk.f32.vlgmr.msra.gmra.mrb[0].mxu1 %vm43_vm2, %v33_v8 }
  0x77   :  { %472 = vmatprep.mubr.msk.f32.mxu1 %vm539_vm0, %v540_v4  ;;  %471 = vmatpush3.msra.mxu1 %v128_v19 }
  0x78   :  { %511 = vmatprep.subr.bf16.mxu1 %v538_v1 }
  0x7a   :  { %473 = vmatmul.mubr.msk.f32.vlgmr.msra.gmra.mrb[2].mxu1 %vm32_vm1, %v26_v0 }
  0x7b   :  { %479 = vmatprep.mubr.msk.f32.mxu1 %vm539_vm0, %v540_v4  ;;  %513 = vmatpush3.bf16.msra.mxu1 %v512_v22 }
  0x7c   :  { %514 = vmatprep.subr.bf16.mxu1 %v538_v1 }
 0x149   :  { %v113_v10 = vpop.f32.mrb[0].mxu1 }
 0x14a   :  { %v114_v11 = vadd.f32 %v437_v9, %v113_v10  ;;  %v469_v12 = vpop.f32.mrb[1].mxu1 }
 0x14c   :  { %v117_v13 = vsel %vm43_vm2, %v114_v11, -inf }
 0x14d   :  { %118 = vmax.xlane.f32.xlu0 %v117_v13  ;;  %v197_v38 = vpop.f32.mrb[2].mxu1 }
 0x14e   :  { %v474_v39 = vpop.f32.mrb[3].mxu1 }
 0x1da   :  { %v119_v14 = vpop.xlane.xlu0 %118 }
 0x1db   :  { %v120_v15 = vsub.f32 %v114_v11, %v119_v14 }
 0x1dd   :  { %v121_v16 = vmul.f32 1.442695, %v120_v15 }
 0x1df   :  { %534 = vpow2.f32 %v121_v16 }
 0x1e9   :  { %v535_v17 = vpop.eup %534 }
 0x1ea   :  { %v123_v18 = vsel %vm43_vm2, %v535_v17, 0.0 }
 0x1eb   :  { %124 = vadd.xlane.f32.xlu1 %v123_v18 }
 0x278   :  { %v125_v32 = vpop.xlane.xlu1 %124 }
 0x279   :  { %536 = vrcp.f32 %v125_v32 }
 0x283   :  { %v537_v35 = vpop.eup %536 }
 0x284   :  { %v127_v37 = vmul.f32 %v537_v35, %v535_v17 }
 0x286   :  { %480 = vmatmul.mubr.msk.f32.vlgmr.msra.gmra.mrb[4].mxu1 %vm43_vm2, %v127_v37 }
 0x287   :  { %516 = vmatpush3.bf16.msra.mxu1 %v515_v36  ;;  %486 = vmatprep.mubr.msk.f32.mxu1 %vm539_vm0, %v540_v4 }
 0x28a   :  { %487 = vmatmul.mubr.msk.f32.vlgmr.msra.gmra.mrb[6].mxu1 %vm43_vm2, %v127_v37 }
 0x359   :  { %v272_v43 = vpop.f32.mrb[4].mxu1 }
 0x35a   :  { %v276_v44 = vmul.f32 %v272_v43, %v197_v38  ;;  %v481_v45 = vpop.f32.mrb[5].mxu1 }
 0x35c   :  { %506 = vmatmul.mubr.msk.f32.vlgmr.msra.gmra.mrb[0].mxu0 %vm357_vm3, %v276_v44 }
 0x35d   :  { %v353_v46 = vpop.f32.mrb[6].mxu1 }
 0x35e   :  { %v488_v47 = vpop.f32.mrb[7].mxu1 }
 0x42f   :  { %v427_v48 = vpop.f32.mrb[0].mxu0 }
 0x430   :  { %v428_v49 = vadd.f32 %v427_v48, %v353_v46  ;;  %v507_v50 = vpop.f32.mrb[1].mxu0 }
 0x432   :  { %432 = vst.msk [vmem:[%s661_s7] sm:$0xff] %vm431_vm4, %v428_v49 }

</bundles_post_ra>
